<compile_context>
chip_gen: v6e
topology: v6e:2x2x1
jax: 0.10.0
libtpu: 0.0.40
codegen_flags: <defaults>
</compile_context>

<pallas_src>
import functools

import jax
import jax.numpy as jnp
from jax.experimental import pallas as pl
from jax.experimental.pallas import tpu as pltpu


def attn_rope_kernel(x_ref, w_ref, cos_ref, sin_ref, mask_ref, bias_ref,
                     gamma_ref, beta_ref, o_ref, *, num_heads, emb):
    H = num_heads
    E = emb
    L = x_ref.shape[1]

    x = x_ref[0]                                                  # (L, E)

    # Fused QKV(+rotated QK) projection: one dense MXU op, (L, 5E) output.
    proj = jnp.dot(x, w_ref[...], preferred_element_type=jnp.float32)

    qk = proj[:, 0:2 * E]                                         # [q*s | k]
    qk_rot = proj[:, 2 * E:4 * E]                                 # [q*s@R | k@R]
    v = proj[:, 4 * E:5 * E]                                      # (L, E)

    # RoPE for q and k together: t*cos + (t@R)*sin, no roll / select needed.
    qk = qk * cos_ref[...] + qk_rot * sin_ref[...]                # (L, 2E)
    q = qk[:, :E]                                                 # (L, E)
    k = qk[:, E:]                                                 # (L, E)

    colmask = mask_ref[...]                                       # (H, 1, E) one-hot per head

    # Head-batched attention with no reshapes/transposes: mask q/v columns per
    # head; masked-out lanes contribute exact zeros to the contraction.
    qh = q[None, :, :] * colmask                                  # (H, L, E)
    vh = v[None, :, :] * colmask                                  # (H, L, E)
    kb = jnp.broadcast_to(k[None, :, :], (H, L, E))               # (H, L, E)

    s = jax.lax.dot_general(qh, kb, (((2,), (2,)), ((0,), (0,))),
                            preferred_element_type=jnp.float32)   # (H, L, L)

    # stable softmax over keys
    s = s - jnp.max(s, axis=-1, keepdims=True)
    p = jnp.exp(s)
    attn = p * pl.reciprocal(jnp.sum(p, axis=-1, keepdims=True), approx=True)

    # Reference adds the relative bias AFTER the softmax -- keep that.
    attn = attn + bias_ref[...]                                   # (H, L, L)

    oh = jax.lax.dot_general(attn, vh, (((2,), (1,)), ((0,), (0,))),
                             preferred_element_type=jnp.float32)  # (H, L, E)

    # Head merge: each head only populates its own column block, so summing
    # over the head axis assembles (L, E).  Unrolled as H-1 dense VPU adds.
    out = oh[0]
    for h in range(1, H):
        out = out + oh[h]                                         # (L, E)

    # LayerNorm (PyTorch defaults: eps=1e-5, biased variance).
    mu = jnp.mean(out, axis=-1, keepdims=True)
    var = jnp.mean((out - mu) ** 2, axis=-1, keepdims=True)
    normed = (out - mu) * jax.lax.rsqrt(var + 1e-5)
    o_ref[0] = normed * gamma_ref[...] + beta_ref[...]


def attention_rope_pallas(x, w_combo, cos2, sin2, colmask, rel_bias,
                          gamma, beta, num_heads):
    B, L, E = x.shape
    kernel = functools.partial(attn_rope_kernel, num_heads=num_heads, emb=E)
    return pl.pallas_call(
        kernel,
        out_shape=jax.ShapeDtypeStruct((B, L, E), jnp.float32),
        grid_spec=pltpu.PrefetchScalarGridSpec(
            num_scalar_prefetch=0,
            grid=(B,),
            in_specs=[
                pl.BlockSpec((1, L, E), lambda b: (b, 0, 0)),             # x
                pl.BlockSpec((E, 5 * E), lambda b: (0, 0)),               # fused weights
                pl.BlockSpec((L, 2 * E), lambda b: (0, 0)),               # cos (q|k)
                pl.BlockSpec((L, 2 * E), lambda b: (0, 0)),               # sin (q|k)
                pl.BlockSpec((num_heads, 1, E), lambda b: (0, 0, 0)),     # head column mask
                pl.BlockSpec((num_heads, L, L), lambda b: (0, 0, 0)),     # relative bias
                pl.BlockSpec((1, E), lambda b: (0, 0)),                   # gamma
                pl.BlockSpec((1, E), lambda b: (0, 0)),                   # beta
            ],
            out_specs=pl.BlockSpec((1, L, E), lambda b: (b, 0, 0)),
        ),
        compiler_params=pltpu.CompilerParams(
            dimension_semantics=("parallel",)),
    )(x, w_combo, cos2, sin2, colmask, rel_bias, gamma, beta)


# ---------------- pure-JAX reference (mirrors the PyTorch forward) -----------
def reference_forward(x, wq, wk, wv, bias_table, gamma, beta, num_heads):
    B, L, E = x.shape
    Dh = E // num_heads

    def proj(w):
        return (x @ w.T).reshape(B, L, num_heads, Dh).transpose(0, 2, 1, 3)

    q, k, v = proj(wq), proj(wk), proj(wv)

    ids = jnp.arange(Dh // 2, dtype=jnp.float32)
    theta = 10000.0 ** (-2.0 * ids / Dh)
    ang = jnp.arange(L, dtype=jnp.float32)[:, None] * theta       # (L, Dh/2)
    cos_pos = jnp.repeat(jnp.cos(ang), 2, axis=-1)                # (L, Dh)
    sin_pos = jnp.repeat(jnp.sin(ang), 2, axis=-1)

    def rope(t):
        t2 = jnp.stack([-t[..., 1::2], t[..., ::2]], axis=-1).reshape(t.shape)
        return t * cos_pos + t2 * sin_pos

    q, k = rope(q), rope(k)
    attn = jnp.einsum('bhld,bhmd->bhlm', q, k) * (float(E) ** -0.5)
    attn = jax.nn.softmax(attn, axis=-1)

    rel_idx = (jnp.arange(L)[:, None] - jnp.arange(L)[None, :]) + L - 1
    rel_bias = bias_table[rel_idx.reshape(-1), :8]                # (L*L, 8)
    rel_bias = rel_bias.reshape(L, L, 8).transpose(2, 0, 1)[None]  # (1,8,L,L)
    attn = attn + rel_bias

    out = jnp.einsum('bhlm,bhmd->bhld', attn, v)
    out = out.transpose(0, 2, 1, 3).reshape(B, L, E)
    mu = out.mean(-1, keepdims=True)
    var = ((out - mu) ** 2).mean(-1, keepdims=True)
    return (out - mu) / jnp.sqrt(var + 1e-5) * gamma + beta


if __name__ == "__main__":
    # small shapes: batch=2, seq=8, emb=32, heads=8 (module hardcodes repeat(1, 8))
    B, L, E, H = 2, 8, 32, 8
    Dh = E // H
    scale = float(E) ** -0.5

    key = jax.random.PRNGKey(0)
    kx, kq, kk, kv, kb = jax.random.split(key, 5)

    x = jax.random.normal(kx, (B, L, E), dtype=jnp.float32)
    # nn.Linear weights are (out, in)
    wq = jax.random.normal(kq, (E, E), dtype=jnp.float32) * (E ** -0.5)
    wk = jax.random.normal(kk, (E, E), dtype=jnp.float32) * (E ** -0.5)
    wv = jax.random.normal(kv, (E, E), dtype=jnp.float32) * (E ** -0.5)
    # relative_bias_table is zeros in __init__; use small random values to
    # exercise the bias path (deterministic).
    bias_table = 0.02 * jax.random.normal(kb, (2 * L - 1, H), dtype=jnp.float32)
    gamma = jnp.ones((E,), dtype=jnp.float32)   # LayerNorm defaults
    beta = jnp.zeros((E,), dtype=jnp.float32)
    # TODO(synk): nn.Dropout is defined but never applied in forward(); omitted.

    # ---- host-side constant folding (weights / tables / masks) ----
    # RoPE pair-rotation matrix: (q @ R)[:, 2i] = -q[:, 2i+1], (q @ R)[:, 2i+1] = q[:, 2i]
    ev = jnp.arange(0, E, 2)
    od = ev + 1
    R = jnp.zeros((E, E), jnp.float32).at[od, ev].set(-1.0).at[ev, od].set(1.0)

    wq_t = wq.T * scale            # fold 1/sqrt(E) score scale into Wq
    wk_t = wk.T
    wv_t = wv.T
    w_combo = jnp.concatenate([wq_t, wk_t, wq_t @ R, wk_t @ R, wv_t], axis=1)  # (E, 5E)

    ids = jnp.arange(Dh // 2, dtype=jnp.float32)
    theta = 10000.0 ** (-2.0 * ids / Dh)
    ang = jnp.arange(L, dtype=jnp.float32)[:, None] * theta        # (L, Dh/2)
    cos_pos = jnp.repeat(jnp.cos(ang), 2, axis=-1)                 # (L, Dh)
    sin_pos = jnp.repeat(jnp.sin(ang), 2, axis=-1)
    cos2 = jnp.tile(cos_pos, (1, 2 * H))                           # (L, 2E): [q | k]
    sin2 = jnp.tile(sin_pos, (1, 2 * H))

    # one-hot per-head column mask over the embedding axis
    colmask = (jnp.arange(E) // Dh == jnp.arange(H)[:, None]).astype(jnp.float32)
    colmask = colmask[:, None, :]                                  # (H, 1, E)

    rel_idx = (jnp.arange(L)[:, None] - jnp.arange(L)[None, :]) + L - 1
    rel_bias = bias_table[rel_idx.reshape(-1), :H]                 # (L*L, H)
    rel_bias = rel_bias.reshape(L, L, H).transpose(2, 0, 1)        # (H, L, L)

    out = attention_rope_pallas(
        x, w_combo, cos2, sin2, colmask, rel_bias,
        gamma.reshape(1, E), beta.reshape(1, E), H)
    out = jax.block_until_ready(out)

    ref = reference_forward(x, wq, wk, wv, bias_table, gamma, beta, H)
    ref = jax.block_until_ready(ref)

    assert out.shape == (B, L, E)
    assert bool(jnp.allclose(out, ref, atol=5e-2, rtol=5e-2)), \
        f"max abs diff {float(jnp.max(jnp.abs(out - ref)))}"
    print("KERNEL_OK")
</pallas_src>

<mosaic_0001>
module attributes {stable_mosaic.version = 11 : i64} {
  func.func @attn_rope_kernel(%arg0: i32, %arg1: memref<1x8x32xf32, #tpu.memory_space<vmem>>, %arg2: memref<32x160xf32, #tpu.memory_space<vmem>>, %arg3: memref<8x64xf32, #tpu.memory_space<vmem>>, %arg4: memref<8x64xf32, #tpu.memory_space<vmem>>, %arg5: memref<8x1x32xf32, #tpu.memory_space<vmem>>, %arg6: memref<8x8x8xf32, #tpu.memory_space<vmem>>, %arg7: memref<1x32xf32, #tpu.memory_space<vmem>>, %arg8: memref<1x32xf32, #tpu.memory_space<vmem>>, %arg9: memref<1x8x32xf32, #tpu.memory_space<vmem>>) attributes {dimension_semantics = [#tpu.dimension_semantics<parallel>], iteration_bounds = array<i64: 2>, scalar_prefetch = 0 : i64, scratch_operands = 0 : i64, tpu.core_type = #tpu.core_type<tc>, window_params = [{transform_indices = @transform_0, window_bounds = array<i64: 1, 8, 32>}, {pipeline_mode = #tpu.pipeline_mode<synchronous>, transform_indices = @transform_1, window_bounds = array<i64: 32, 160>}, {pipeline_mode = #tpu.pipeline_mode<synchronous>, transform_indices = @transform_2, window_bounds = array<i64: 8, 64>}, {pipeline_mode = #tpu.pipeline_mode<synchronous>, transform_indices = @transform_3, window_bounds = array<i64: 8, 64>}, {pipeline_mode = #tpu.pipeline_mode<synchronous>, transform_indices = @transform_4, window_bounds = array<i64: 8, 1, 32>}, {pipeline_mode = #tpu.pipeline_mode<synchronous>, transform_indices = @transform_5, window_bounds = array<i64: 8, 8, 8>}, {pipeline_mode = #tpu.pipeline_mode<synchronous>, transform_indices = @transform_6, window_bounds = array<i64: 1, 32>}, {pipeline_mode = #tpu.pipeline_mode<synchronous>, transform_indices = @transform_7, window_bounds = array<i64: 1, 32>}, {transform_indices = @transform_8, window_bounds = array<i64: 1, 8, 32>}]} {
    %c0 = arith.constant 0 : index
    %c0_0 = arith.constant 0 : index
    %c0_1 = arith.constant 0 : index
    %0 = vector.load %arg1[%c0, %c0_0, %c0_1] : memref<1x8x32xf32, #tpu.memory_space<vmem>>, vector<1x8x32xf32>
    %1 = vector.shape_cast %0 : vector<1x8x32xf32> to vector<8x32xf32>
    %c0_2 = arith.constant 0 : index
    %c0_3 = arith.constant 0 : index
    %2 = vector.load %arg2[%c0_2, %c0_3] : memref<32x160xf32, #tpu.memory_space<vmem>>, vector<32x160xf32>
    %cst = arith.constant dense<0.000000e+00> : vector<8x160xf32>
    %3 = tpu.matmul %1, %2, %cst {dimension_numbers = #tpu.dot_dimension_numbers<[1], [0], [0], [1], [0, 0, 1, 1], [], []>} : vector<8x32xf32>, vector<32x160xf32>, vector<8x160xf32> -> vector<8x160xf32>
    %4 = vector.extract_strided_slice %3 {offsets = [0, 0], sizes = [8, 64], strides = [1, 1]} : vector<8x160xf32> to vector<8x64xf32>
    %5 = vector.extract_strided_slice %3 {offsets = [0, 64], sizes = [8, 64], strides = [1, 1]} : vector<8x160xf32> to vector<8x64xf32>
    %6 = vector.extract_strided_slice %3 {offsets = [0, 128], sizes = [8, 32], strides = [1, 1]} : vector<8x160xf32> to vector<8x32xf32>
    %c0_4 = arith.constant 0 : index
    %c0_5 = arith.constant 0 : index
    %7 = vector.load %arg3[%c0_4, %c0_5] : memref<8x64xf32, #tpu.memory_space<vmem>>, vector<8x64xf32>
    %8 = arith.mulf %4, %7 : vector<8x64xf32>
    %c0_6 = arith.constant 0 : index
    %c0_7 = arith.constant 0 : index
    %9 = vector.load %arg4[%c0_6, %c0_7] : memref<8x64xf32, #tpu.memory_space<vmem>>, vector<8x64xf32>
    %10 = arith.mulf %5, %9 : vector<8x64xf32>
    %11 = arith.addf %8, %10 : vector<8x64xf32>
    %12 = vector.extract_strided_slice %11 {offsets = [0, 0], sizes = [8, 32], strides = [1, 1]} : vector<8x64xf32> to vector<8x32xf32>
    %13 = vector.extract_strided_slice %11 {offsets = [0, 32], sizes = [8, 32], strides = [1, 1]} : vector<8x64xf32> to vector<8x32xf32>
    %c0_8 = arith.constant 0 : index
    %c0_9 = arith.constant 0 : index
    %c0_10 = arith.constant 0 : index
    %14 = vector.load %arg5[%c0_8, %c0_9, %c0_10] : memref<8x1x32xf32, #tpu.memory_space<vmem>>, vector<8x1x32xf32>
    %15 = vector.shape_cast %12 : vector<8x32xf32> to vector<1x8x32xf32>
    %16 = vector.broadcast %15 : vector<1x8x32xf32> to vector<8x8x32xf32>
    %17 = vector.broadcast %14 : vector<8x1x32xf32> to vector<8x8x32xf32>
    %18 = arith.mulf %16, %17 : vector<8x8x32xf32>
    %19 = vector.shape_cast %6 : vector<8x32xf32> to vector<1x8x32xf32>
    %20 = vector.broadcast %19 : vector<1x8x32xf32> to vector<8x8x32xf32>
    %21 = vector.broadcast %14 : vector<8x1x32xf32> to vector<8x8x32xf32>
    %22 = arith.mulf %20, %21 : vector<8x8x32xf32>
    %23 = vector.shape_cast %13 : vector<8x32xf32> to vector<1x8x32xf32>
    %24 = vector.shape_cast %23 : vector<1x8x32xf32> to vector<1x8x32xf32>
    %25 = vector.broadcast %24 : vector<1x8x32xf32> to vector<8x8x32xf32>
    %cst_11 = arith.constant dense<0.000000e+00> : vector<8x8x8xf32>
    %26 = tpu.matmul %18, %25, %cst_11 {dimension_numbers = #tpu.dot_dimension_numbers<[2], [2], [1], [1], [0, 0, 0, 1, 1, 1], [0], [0]>} : vector<8x8x32xf32>, vector<8x8x32xf32>, vector<8x8x8xf32> -> vector<8x8x8xf32>
    %cst_12 = arith.constant dense<0xFF800000> : vector<8x8xf32>
    %27 = vector.multi_reduction <maximumf>, %26, %cst_12 [2] : vector<8x8x8xf32> to vector<8x8xf32>
    %28 = vector.shape_cast %27 : vector<8x8xf32> to vector<8x8x1xf32>
    %29 = vector.broadcast %28 : vector<8x8x1xf32> to vector<8x8x8xf32>
    %30 = arith.subf %26, %29 : vector<8x8x8xf32>
    %31 = math.exp %30 : vector<8x8x8xf32>
    %cst_13 = arith.constant dense<0.000000e+00> : vector<8x8xf32>
    %32 = vector.multi_reduction <add>, %31, %cst_13 [2] : vector<8x8x8xf32> to vector<8x8xf32>
    %33 = vector.shape_cast %32 : vector<8x8xf32> to vector<8x8x1xf32>
    %34 = tpu.reciprocal %33 {approx = true} : vector<8x8x1xf32> -> vector<8x8x1xf32>
    %35 = vector.broadcast %34 : vector<8x8x1xf32> to vector<8x8x8xf32>
    %36 = arith.mulf %31, %35 : vector<8x8x8xf32>
    %c0_14 = arith.constant 0 : index
    %c0_15 = arith.constant 0 : index
    %c0_16 = arith.constant 0 : index
    %37 = vector.load %arg6[%c0_14, %c0_15, %c0_16] : memref<8x8x8xf32, #tpu.memory_space<vmem>>, vector<8x8x8xf32>
    %38 = arith.addf %36, %37 : vector<8x8x8xf32>
    %cst_17 = arith.constant dense<0.000000e+00> : vector<8x8x32xf32>
    %39 = tpu.matmul %38, %22, %cst_17 {dimension_numbers = #tpu.dot_dimension_numbers<[2], [1], [1], [2], [0, 0, 0, 1, 1, 2], [0], [0]>} : vector<8x8x8xf32>, vector<8x8x32xf32>, vector<8x8x32xf32> -> vector<8x8x32xf32>
    %40 = vector.extract_strided_slice %39 {offsets = [0, 0, 0], sizes = [1, 8, 32], strides = [1, 1, 1]} : vector<8x8x32xf32> to vector<1x8x32xf32>
    %41 = vector.shape_cast %40 : vector<1x8x32xf32> to vector<8x32xf32>
    %42 = vector.extract_strided_slice %39 {offsets = [1, 0, 0], sizes = [1, 8, 32], strides = [1, 1, 1]} : vector<8x8x32xf32> to vector<1x8x32xf32>
    %43 = vector.shape_cast %42 : vector<1x8x32xf32> to vector<8x32xf32>
    %44 = arith.addf %41, %43 : vector<8x32xf32>
    %45 = vector.extract_strided_slice %39 {offsets = [2, 0, 0], sizes = [1, 8, 32], strides = [1, 1, 1]} : vector<8x8x32xf32> to vector<1x8x32xf32>
    %46 = vector.shape_cast %45 : vector<1x8x32xf32> to vector<8x32xf32>
    %47 = arith.addf %44, %46 : vector<8x32xf32>
    %48 = vector.extract_strided_slice %39 {offsets = [3, 0, 0], sizes = [1, 8, 32], strides = [1, 1, 1]} : vector<8x8x32xf32> to vector<1x8x32xf32>
    %49 = vector.shape_cast %48 : vector<1x8x32xf32> to vector<8x32xf32>
    %50 = arith.addf %47, %49 : vector<8x32xf32>
    %51 = vector.extract_strided_slice %39 {offsets = [4, 0, 0], sizes = [1, 8, 32], strides = [1, 1, 1]} : vector<8x8x32xf32> to vector<1x8x32xf32>
    %52 = vector.shape_cast %51 : vector<1x8x32xf32> to vector<8x32xf32>
    %53 = arith.addf %50, %52 : vector<8x32xf32>
    %54 = vector.extract_strided_slice %39 {offsets = [5, 0, 0], sizes = [1, 8, 32], strides = [1, 1, 1]} : vector<8x8x32xf32> to vector<1x8x32xf32>
    %55 = vector.shape_cast %54 : vector<1x8x32xf32> to vector<8x32xf32>
    %56 = arith.addf %53, %55 : vector<8x32xf32>
    %57 = vector.extract_strided_slice %39 {offsets = [6, 0, 0], sizes = [1, 8, 32], strides = [1, 1, 1]} : vector<8x8x32xf32> to vector<1x8x32xf32>
    %58 = vector.shape_cast %57 : vector<1x8x32xf32> to vector<8x32xf32>
    %59 = arith.addf %56, %58 : vector<8x32xf32>
    %60 = vector.extract_strided_slice %39 {offsets = [7, 0, 0], sizes = [1, 8, 32], strides = [1, 1, 1]} : vector<8x8x32xf32> to vector<1x8x32xf32>
    %61 = vector.shape_cast %60 : vector<1x8x32xf32> to vector<8x32xf32>
    %62 = arith.addf %59, %61 : vector<8x32xf32>
    %cst_18 = arith.constant dense<0.000000e+00> : vector<8xf32>
    %63 = vector.multi_reduction <add>, %62, %cst_18 [1] : vector<8x32xf32> to vector<8xf32>
    %64 = vector.shape_cast %63 : vector<8xf32> to vector<8x1xf32>
    %cst_19 = arith.constant 3.200000e+01 : f32
    %65 = vector.broadcast %cst_19 : f32 to vector<8x1xf32>
    %66 = arith.divf %64, %65 : vector<8x1xf32>
    %67 = vector.broadcast %66 : vector<8x1xf32> to vector<8x32xf32>
    %68 = arith.subf %62, %67 : vector<8x32xf32>
    %69 = arith.mulf %68, %68 : vector<8x32xf32>
    %cst_20 = arith.constant dense<0.000000e+00> : vector<8xf32>
    %70 = vector.multi_reduction <add>, %69, %cst_20 [1] : vector<8x32xf32> to vector<8xf32>
    %71 = vector.shape_cast %70 : vector<8xf32> to vector<8x1xf32>
    %cst_21 = arith.constant 3.200000e+01 : f32
    %72 = vector.broadcast %cst_21 : f32 to vector<8x1xf32>
    %73 = arith.divf %71, %72 : vector<8x1xf32>
    %74 = vector.broadcast %66 : vector<8x1xf32> to vector<8x32xf32>
    %75 = arith.subf %62, %74 : vector<8x32xf32>
    %cst_22 = arith.constant 9.99999974E-6 : f32
    %76 = vector.broadcast %cst_22 : f32 to vector<8x1xf32>
    %77 = arith.addf %73, %76 : vector<8x1xf32>
    %78 = math.rsqrt %77 : vector<8x1xf32>
    %79 = vector.broadcast %78 : vector<8x1xf32> to vector<8x32xf32>
    %80 = arith.mulf %75, %79 : vector<8x32xf32>
    %c0_23 = arith.constant 0 : index
    %c0_24 = arith.constant 0 : index
    %81 = vector.load %arg7[%c0_23, %c0_24] : memref<1x32xf32, #tpu.memory_space<vmem>>, vector<1x32xf32>
    %82 = vector.broadcast %81 : vector<1x32xf32> to vector<8x32xf32>
    %83 = arith.mulf %80, %82 : vector<8x32xf32>
    %c0_25 = arith.constant 0 : index
    %c0_26 = arith.constant 0 : index
    %84 = vector.load %arg8[%c0_25, %c0_26] : memref<1x32xf32, #tpu.memory_space<vmem>>, vector<1x32xf32>
    %85 = vector.broadcast %84 : vector<1x32xf32> to vector<8x32xf32>
    %86 = arith.addf %83, %85 : vector<8x32xf32>
    %c0_27 = arith.constant 0 : index
    %c0_28 = arith.constant 0 : index
    %c0_29 = arith.constant 0 : index
    %87 = vector.load %arg9[%c0_27, %c0_28, %c0_29] : memref<1x8x32xf32, #tpu.memory_space<vmem>>, vector<1x8x32xf32>
    %88 = vector.shape_cast %87 : vector<1x8x32xf32> to vector<8x32xf32>
    %89 = vector.shape_cast %86 : vector<8x32xf32> to vector<1x8x32xf32>
    tpu.vector_store %arg9[%c0_27, %c0_28, %c0_29], %89 {strides = array<i32>} : memref<1x8x32xf32, #tpu.memory_space<vmem>>, vector<1x8x32xf32>,
    return
  }
  func.func @transform_0(%arg0: i32) -> (i32, i32, i32) {
    %c0_i32 = arith.constant 0 : i32
    %c0_i32_0 = arith.constant 0 : i32
    %c0_i32_1 = arith.constant 0 : i32
    return %arg0, %c0_i32, %c0_i32_0 : i32, i32, i32
  }
  func.func @transform_1(%arg0: i32) -> (i32, i32) {
    %c0_i32 = arith.constant 0 : i32
    %c0_i32_0 = arith.constant 0 : i32
    %c0_i32_1 = arith.constant 0 : i32
    return %c0_i32, %c0_i32_0 : i32, i32
  }
  func.func @transform_2(%arg0: i32) -> (i32, i32) {
    %c0_i32 = arith.constant 0 : i32
    %c0_i32_0 = arith.constant 0 : i32
    %c0_i32_1 = arith.constant 0 : i32
    return %c0_i32, %c0_i32_0 : i32, i32
  }
  func.func @transform_3(%arg0: i32) -> (i32, i32) {
    %c0_i32 = arith.constant 0 : i32
    %c0_i32_0 = arith.constant 0 : i32
    %c0_i32_1 = arith.constant 0 : i32
    return %c0_i32, %c0_i32_0 : i32, i32
  }
  func.func @transform_4(%arg0: i32) -> (i32, i32, i32) {
    %c0_i32 = arith.constant 0 : i32
    %c0_i32_0 = arith.constant 0 : i32
    %c0_i32_1 = arith.constant 0 : i32
    %c0_i32_2 = arith.constant 0 : i32
    return %c0_i32, %c0_i32_0, %c0_i32_1 : i32, i32, i32
  }
  func.func @transform_5(%arg0: i32) -> (i32, i32, i32) {
    %c0_i32 = arith.constant 0 : i32
    %c0_i32_0 = arith.constant 0 : i32
    %c0_i32_1 = arith.constant 0 : i32
    %c0_i32_2 = arith.constant 0 : i32
    return %c0_i32, %c0_i32_0, %c0_i32_1 : i32, i32, i32
  }
  func.func @transform_6(%arg0: i32) -> (i32, i32) {
    %c0_i32 = arith.constant 0 : i32
    %c0_i32_0 = arith.constant 0 : i32
    %c0_i32_1 = arith.constant 0 : i32
    return %c0_i32, %c0_i32_0 : i32, i32
  }
  func.func @transform_7(%arg0: i32) -> (i32, i32) {
    %c0_i32 = arith.constant 0 : i32
    %c0_i32_0 = arith.constant 0 : i32
    %c0_i32_1 = arith.constant 0 : i32
    return %c0_i32, %c0_i32_0 : i32, i32
  }
  func.func @transform_8(%arg0: i32) -> (i32, i32, i32) {
    %c0_i32 = arith.constant 0 : i32
    %c0_i32_0 = arith.constant 0 : i32
    %c0_i32_1 = arith.constant 0 : i32
    return %arg0, %c0_i32, %c0_i32_0 : i32, i32, i32
  }
}

</mosaic_0001>

<bundles_post_ra>
// kernel: tpu_custom_call.1
= control target key start
LH: loop header
LB: loop body
LE: loop exit
PB: predicated region body
PF: predicated region fallthrough
CT: control target
= control target key end

     0   :  { %s2972_s0 = inlined_call_operand.hbm [shape: f32[2,8,32], index: 0, kind: input, shape index: {}]   ;;  %s2973_s1 = inlined_call_operand.hbm [shape: f32[32,160], index: 1, kind: input, shape index: {}]   ;;  %s2974_s2 = inlined_call_operand.hbm [shape: f32[8,64], index: 2, kind: input, shape index: {}]   ;;  %s2975_s3 = inlined_call_operand.hbm [shape: f32[8,64], index: 3, kind: input, shape index: {}]   ;;  %s2976_s4 = inlined_call_operand.hbm [shape: f32[8,1,32], index: 4, kind: input, shape index: {}]   ;;  %s2977_s5 = inlined_call_operand.hbm [shape: f32[8,8,8], index: 5, kind: input, shape index: {}]   ;;  %s2978_s6 = inlined_call_operand.vmem [shape: f32[1,32], index: 6, kind: input, shape index: {}]   ;;  %s2979_s7 = inlined_call_operand.vmem [shape: f32[1,32], index: 7, kind: input, shape index: {}]   ;;  %s2980_s8 = inlined_call_operand.hbm [shape: f32[2,8,32], index: 8, kind: output, shape index: {}]  }
   0x1   :  { %2985 = sst [smem:[#allocation19_spill]] %s2973_s1 }
   0x2   :  { %2986 = sst [smem:[#allocation20_spill]] %s2974_s2 }
   0x3   :  { %2987 = sst [smem:[#allocation21_spill]] %s2975_s3 }
   0x4   :  { %13 = vsyncpa [#allocation3], 0 }
   0x5   :  { %15 = vsyncpa [#allocation3 + $0x1], 0 }
   0x6   :  { %16 = vsyncpa [#allocation6], 0 }
   0x7   :  { %17 = vsyncpa [#allocation9], 0 }
   0x8   :  { %18 = vsyncpa [#allocation12], 0 }
   0x9   :  { %19 = vsyncpa [#allocation4], 0 }
   0xa   :  { %21 = vsyncpa [#allocation4 + $0x1], 0  ;;  %s2613_s27 = smov 0   ;;  %s2615_s28 = smov 0  }
   0xb   :  { %s2617_s29 = smov 0   ;;  %s2619_s30 = smov 0  }
   0xc LB: > { %s2552_s9 = smov [#allocation5]   ;;  %s2634_s11 = sadd.s32 4294967295, %s2550_s30   ;;  %s2550_s30 = sphi %s2619_s30, %s3013_s30   ;;  %s2546_s29 = sphi %s2617_s29, %s3012_s29   ;;  %s2542_s28 = sphi %s2615_s28, %s3011_s28   ;;  %s2538_s27 = sphi %s2613_s27, %s3010_s27  }
   0xd   : > { %s243_s10 = sshll.u32 %s2552_s9, 4  ;;  %p2008_p0 = scmp.ge.s32.totalorder %s2550_s30, 1  ;;  %s244_s10 = int_to_ptr.vmem [resolvable:$true] %s243_s10 }
   0xe   : > { %p2981_p1 = scmp.eq.s32.totalorder %s2634_s11, 0  ;;  %p231_p2 = scmp.lt.s32.totalorder %s2550_s30, 3 }
   0xf   : > { %s2553_s13 = smov [#allocation8]   ;;  %s2554_s16 = smov [#allocation7]  }
  0x10   : > { %p2639_p3 = pnand %p2008_p0, %p231_p2  ;;  %s268_s14 = sshll.u32 %s2553_s13, 4  ;;  %s269_s14 = int_to_ptr.vmem [resolvable:$true] %s268_s14 }
  0x11   : > { %s257_s17 = sshll.u32 %s2554_s16, 4  ;;  %s2327_s19 = scalar_lea.vmem %s244_s10, 1024  ;;  %s2652_s17 = int_to_ptr.vmem [resolvable:$true] %s257_s17 }
  0x12   : > { %s2988_s12 = scalar_select %p2639_p3, 1, 0 }
  0x13   : > { %p2200_p5 = pneg %p2639_p3  ;;  %p2328_p8 = scmp.ne.s32.totalorder %s244_s10, %s2327_s19 }
  0x14   : > { %p2335_p11 = scmp.lt.s32.totalorder %s244_s10, %s244_s10  ;;  %p2336_p12 = scmp.lt.s32.totalorder %s2327_s19, %s2327_s19 }
  0x15   : > { %p2648_p6 = pnand %p2200_p5, %p2981_p1 }
  0x16   : > { %p2337_p13 = por %p2336_p12, %p2335_p11 }
  0x17   : > { %p2656_p7 = pneg %p2648_p6 }
  0x19   : > { %p2330_p9 = pnand %p2328_p8, %p2656_p7 }
  0x1b   : > { %p2331_p10 = pneg %p2330_p9 }
  0x1d   : > { %p2338_p0 = pnand %p2337_p13, %p2331_p10 }
  0x1f   : > { %2341 = shalt.err (!%p2338_p0)
}
  0x20   : > { %s2555_s20 = smov 256   ;;  %s2556_s21 = smov 16  }
  0x21   : > { %s2991_s1 = sld [smem:[#allocation19_spill]]  ;;  %s2353_s24 = scalar_lea.vmem %s269_s14, 128 }
  0x22   : > { %p2354_p2 = scmp.ne.s32.totalorder %s269_s14, %s2353_s24  ;;  %p2361_p9 = scmp.lt.s32.totalorder %s269_s14, %s269_s14 }
  0x23   : > { %p2362_p4 = scmp.lt.s32.totalorder %s2353_s24, %s2353_s24 }
  0x24   : > { %p2356_p5 = pnand %p2354_p2, %p2656_p7 }
  0x25   : > { %p2363_p11 = por %p2362_p4, %p2361_p9 }
  0x26   : > { %p2357_p8 = pneg %p2356_p5 }
  0x27   : > { %2203 = dma.hbm_to_vmem [thread:$0]  (!%p2648_p6), %s2991_s1, 1024, %s244_s10, [#allocation6], %s2555_s20, %s2555_s20, %s2556_s21  }
  0x28   : > { %p2364_p10 = pnand %p2363_p11, %p2357_p8 }
  0x2a   : > { %2367 = shalt.err (!%p2364_p10)
}
  0x2b   : > { %s2992_s3 = sld [smem:[#allocation21_spill]]  ;;  %s2379_s9 = scalar_lea.vmem %s2652_s17, 128 }
  0x2c   : > { %p2380_p12 = scmp.ne.s32.totalorder %s2652_s17, %s2379_s9  ;;  %p2387_p2 = scmp.lt.s32.totalorder %s2652_s17, %s2652_s17 }
  0x2d   : > { %p2388_p4 = scmp.lt.s32.totalorder %s2379_s9, %s2379_s9 }
  0x2e   : > { %p2382_p13 = pnand %p2380_p12, %p2656_p7 }
  0x2f   : > { %p2389_p5 = por %p2388_p4, %p2387_p2 }
  0x30   : > { %p2383_p0 = pneg %p2382_p13 }
  0x31   : > { %2209 = dma.hbm_to_vmem [thread:$0]  (!%p2648_p6), %s2992_s3, 128, %s269_s14, [#allocation9]  }
  0x32   : > { %p2390_p8 = pnand %p2389_p5, %p2383_p0 }
  0x34   : > { %2393 = shalt.err (!%p2390_p8)
}
  0x35   : > { %s2993_s2 = sld [smem:[#allocation20_spill]]  ;;  %s2557_s14 = smov [#allocation10]  }
  0x36   : > { %s278_s16 = sshll.u32 %s2557_s14, 4  ;;  %s279_s16 = int_to_ptr.vmem [resolvable:$true] %s278_s16 }
  0x37   : > { %s2405_s19 = scalar_lea.vmem %s279_s16, 128  ;;  %p2413_p12 = scmp.lt.s32.totalorder %s279_s16, %s279_s16 }
  0x38   : > { %p2406_p9 = scmp.ne.s32.totalorder %s279_s16, %s2405_s19  ;;  %p2414_p13 = scmp.lt.s32.totalorder %s2405_s19, %s2405_s19 }
  0x3a   : > { %p2408_p11 = pnand %p2406_p9, %p2656_p7  ;;  %p2415_p0 = por %p2414_p13, %p2413_p12 }
  0x3b   : > { %2206 = dma.hbm_to_vmem [thread:$0]  (!%p2648_p6), %s2993_s2, 128, %s2652_s17, [#allocation6]  }
  0x3c   : > { %p2409_p10 = pneg %p2408_p11 }
  0x3e   : > { %p2416_p2 = pnand %p2415_p0, %p2409_p10 }
  0x40   : > { %2419 = shalt.err (!%p2416_p2)
}
  0x41   : > { %s2558_s20 = smov 1   ;;  %s2559_s23 = smov [#allocation11]  }
  0x42   : > { %2212 = dma.hbm_to_vmem [thread:$0]  (!%p2648_p6), %s2976_s4, 128, %s279_s16, [#allocation9], %s2556_s21, %s2556_s21, %s2558_s20  }
  0x43   : > { %s291_s24 = sshll.u32 %s2559_s23, 4  ;;  %s292_s24 = int_to_ptr.vmem [resolvable:$true] %s291_s24 }
  0x44   : > { %s2431_s25 = scalar_lea.vmem %s292_s24, 1024  ;;  %p2439_p9 = scmp.lt.s32.totalorder %s292_s24, %s292_s24 }
  0x45   : > { %p2432_p4 = scmp.ne.s32.totalorder %s292_s24, %s2431_s25  ;;  %p2440_p11 = scmp.lt.s32.totalorder %s2431_s25, %s2431_s25 }
  0x47   : > { %p2434_p5 = pnand %p2432_p4, %p2656_p7  ;;  %p2441_p10 = por %p2440_p11, %p2439_p9 }
  0x49   : > { %p2435_p8 = pneg %p2434_p5 }
  0x4b   : > { %p2442_p12 = pnand %p2441_p10, %p2435_p8 }
  0x4d   : > { %2445 = shalt.err (!%p2442_p12)
}
  0x4e   : > { %s2560_s26 = smov 128   ;;  %s2561_s18 = smov 8  }
  0x4f   : > { %2215 = dma.hbm_to_vmem [thread:$0]  (!%p2648_p6), %s2977_s5, 1024, %s292_s24, [#allocation12], %s2560_s26, %s2560_s26, %s2561_s18  }
  0x50   : > { %s2007_s10 = sadd.s32 4294967294, %s2550_s30   ;;  %s2705_s13 = sadd.s32 1, %s2550_s30  }
  0x51   : > { %s31_s14 = ssub.s32 %s2550_s30, %s2705_s13  ;;  %s34_s16 = sadd.s32 1, %s2546_s29 }
  0x52   : > { %p32_p7 = scmp.eq.s32.totalorder %s31_s14, 0  ;;  %p41_p13 = scmp.ne.s32.totalorder %s2546_s29, %s2542_s28 }
  0x53   : > { %p42_p0 = scmp.eq.s32.totalorder %s2550_s30, 0  ;;  %p47_p2 = scmp.ne.s32.totalorder %s2542_s28, %s2538_s27 }
  0x54   : > { %s2716_s19 = scalar_select %p32_p7, %s2546_s29, %s34_s16  }
  0x55   : > { %p2718_p4 = por %p42_p0, %p41_p13  ;;  %p2724_p6 = por %p2981_p1, %p47_p2 }
  0x56   : > { %p218_p5 = scmp.eq.s32.totalorder %s2634_s11, 1  ;;  %p224_p8 = scmp.eq.s32.totalorder %s2007_s10, 1 }
  0x57   : > { %s2995_s20 = scalar_select %p2724_p6, 1, 0 }
  0x58   : > { %p2229_p9 = scmp.lt.s32.totalorder %s2550_s30, 2  ;;  %s311_s22 = sand.u32 1, %s2546_s29  }
  0x59   : > { %p2731_p11 = por %p218_p5, %p41_p13  ;;  %p2735_p10 = por %p224_p8, %p47_p2 }
  0x5a   : > { %s2015_s24 = sshll.u32 %s311_s22, 3  ;;  %s2016_s25 = sshll.u32 %s2550_s30, 7 }
  0x5b   : > { %s2996_s17 = scalar_select %p2731_p11, 1, 0 }
  0x5c   : > { %s2997_s23 = scalar_select %p2735_p10, 1, 0 }
  0x5d   : > { %s2743_s21 = scalar_lea.hbm %s2972_s0, %s2016_s25  ;;  %s315_s9 = scalar_lea.vmem [#allocation2], %s2015_s24 }
  0x5e   : > { %s322_s10 = sshll.u32 %s315_s9, 4  ;;  %p2747_p12 = pnand %p2229_p9, %p2718_p4  ;;  %s323_s10 = int_to_ptr.vmem [resolvable:$true] %s322_s10 }
  0x5f   : > { %s312_s16 = scalar_lea.sflag [#allocation3], %s311_s22  ;;  %s2446_s1 = scalar_lea.hbm %s2743_s21, 128 }
  0x60   : > { %p2447_p7 = scmp.ne.s32.totalorder %s2743_s21, %s2446_s1  ;;  %p2448_p13 = pneg %p2747_p12 }
  0x61   : > { %s2451_s18 = scalar_lea.hbm %s2972_s0, 256  ;;  %p2452_p5 = scmp.lt.s32.totalorder %s2743_s21, %s2972_s0 }
  0x62   : > { %p2449_p0 = pnand %p2448_p13, %p2447_p7  ;;  %p2453_p4 = scmp.lt.s32.totalorder %s2451_s18, %s2446_s1 }
  0x64   : > { %p2450_p2 = pneg %p2449_p0  ;;  %p2454_p8 = por %p2453_p4, %p2452_p5 }
  0x66   : > { %p2455_p9 = pnand %p2454_p8, %p2450_p2 }
  0x68   : > { %2458 = shalt.err (!%p2455_p9)
}
  0x69   : > { %s2459_s15 = scalar_lea.vmem %s323_s10, 128  ;;  %s2562_s22 = smov [#allocation2]  }
  0x6a   : > { %p2460_p1 = scmp.ne.s32.totalorder %s323_s10, %s2459_s15  ;;  %s2464_s2 = sshll.u32 %s2562_s22, 4  ;;  %s2465_s2 = int_to_ptr.vmem [resolvable:$false] %s2464_s2 }
  0x6b   : > { %s2466_s3 = scalar_lea.vmem %s2465_s2, 256  ;;  %p2467_p7 = scmp.lt.s32.totalorder %s323_s10, %s2465_s2 }
  0x6c   : > { %p2462_p10 = pnand %p2460_p1, %p2448_p13  ;;  %p2468_p0 = scmp.lt.s32.totalorder %s2466_s3, %s2459_s15 }
  0x6e   : > { %p2463_p11 = pneg %p2462_p10  ;;  %p2469_p6 = por %p2468_p0, %p2467_p7 }
  0x70   : > { %p2470_p3 = pnand %p2469_p6, %p2463_p11 }
  0x72   : > { %2473 = shalt.err (!%p2470_p3)
}
  0x73   : > { %2219 = dma.hbm_to_vmem [thread:$0]  (!%p2747_p12), %s2743_s21, 128, %s323_s10, %s312_s16  }
  0x74   : > { %p2999_p2 = scmp.ne.s32.totalorder %s2988_s12, 0 }
  0x75   : > { %s2768_s1 = sand.u32 (!%p2999_p2), 1, %s2542_s28   ;;  %p3000_p1 = scmp.ne.s32.totalorder (!%p2999_p2), %s2995_s20, 0 }
  0x76   : > { %331 = sbr.rel (%p2999_p2) target bundleno = 1615 (0x64f), region = 52  ;;  %s2018_s25 = sshll.u32 (!%p2999_p2), %s2768_s1, 3 }
  0x77   : > { %s334_s2 = scalar_lea.sflag (!%p2999_p2), [#allocation3], %s2768_s1  ;;  %s337_s3 = scalar_lea.vmem (!%p2999_p2), [#allocation2], %s2018_s25 }
  0x7b   : > { %2517 = dma.done.wait (%p3000_p1), %s334_s2, 128  }
  0x7c   : > { %2519 = vsyncadd (%p3000_p1), %s334_s2, 4294967168  ;;  %p3001_p3 = scmp.eq.s32.totalorder %s2634_s11, 0 }
  0x7e   : > { %2521 = dma.done.wait (%p3001_p3), [#allocation6], 1152   ;;  %p3002_p6 = pmov %p3001_p3 }
  0x7f   : > { %p3003_p11 = pmov %p3001_p3 }
  0x80   : > { %2523 = vsyncadd (%p3002_p6), [#allocation6], 4294966144 }
  0x81   : > { %2525 = dma.done.wait (%p3003_p11), [#allocation9], 256   ;;  %p3004_p10 = pmov %p3001_p3 }
  0x82   : > { %p3005_p12 = pmov %p3001_p3 }
  0x83   : > { %2527 = vsyncadd (%p3004_p10), [#allocation9], 4294967040 }
  0x84   : > { %2529 = dma.done.wait (%p3005_p12), [#allocation12], 1024   ;;  %p3006_p13 = pmov %p3001_p3 }
  0x85   : > { %v2563_v0 = vmov 0.0   ;;  %v398_v1 = vld [vmem:[#allocation5 + $0x38] sm:$0xff]  ;;  %v397_v2 = vld [vmem:[#allocation5 + $0x30] sm:$0xff]  ;;  %v396_v3 = vld [vmem:[#allocation5 + $0x28] sm:$0xff]  ;;  %s2564_s12 = smov 64   ;;  %vm399_vm0 = vcmask 261120  }
  0x86   : > { %2531 = vsyncadd (%p3006_p13), [#allocation12], 4294966272  ;;  %467 = vmatprep.mubr.f32.mxu0 %v2563_v0  ;;  %2096 = vmatprep.subr.mxu1 %v2563_v0  ;;  %v395_v4 = vld [vmem:[#allocation5 + $0x20] sm:$0xff]  ;;  %v394_v5 = vld [vmem:[#allocation5 + $0x18] sm:$0xff]  ;;  %vm2565_vm1 = vmmov 0   ;;  %s2566_s20 = smov 96  }
  0x87   : > { %427 = vmatprep.subr.mxu0 %v398_v1  ;;  %v393_v6 = vld [vmem:[#allocation5 + $0x10] sm:$0xff]  ;;  %v476_v7 = vld [vmem:[#allocation8] sm:$0xff]  ;;  %v391_v9 = vld [vmem:[#allocation5] sm:$0xff]  ;;  %2098 = vmatprep.mubr.msk.f32.mxu1 %vm2565_vm1, %v2563_v0  ;;  %vm1148_vm2 = vcmask 64512   ;;  %s2061_s26 = sshll.u32 %s2634_s11, 7  ;;  %s389_s18 = scalar_lea.vmem [#allocation13], %s2018_s25 }
  0x88   : > { %428 = vmatpush1.msra.mxu0 %v397_v2  ;;  %v392_v8 = vld [vmem:[#allocation5 + $0x8] sm:$0xff]  ;;  %478 = vrot.lane.b32.xlu0 %v476_v7, %s2564_s12  ;;  %v390_v10 = vld [vmem:[%s337_s3] sm:$0xff]  ;;  %v474_v14 = vld [vmem:[#allocation7] sm:$0xff]  ;;  %s1889_s24 = sshll.u32 %s389_s18, 4  ;;  %s1887_s22 = scalar_lea.hbm %s2980_s8, %s2061_s26  ;;  %s1890_s24 = int_to_ptr.vmem [resolvable:$true] %s1889_s24 }
  0x89   : > { %429 = vmatprep.subr.mxu0 %v396_v3  ;;  %v2026_v19 = vld [vmem:[#allocation10] ss:$0 sm:$0xff]  ;;  %v2800_v20 = vld [vmem:[#allocation10 + $0x2] ss:$0 sm:$0xff]  ;;  %v2027_v23 = vld [vmem:[#allocation10 + $0x1] ss:$0 sm:$0xff] }
  0x8a   : > { %430 = vmatpush1.msra.mxu0 %v395_v4  ;;  %v2809_v24 = vld [vmem:[#allocation10 + $0x4] ss:$0 sm:$0xff]  ;;  %v2824_v28 = vld [vmem:[#allocation10 + $0x3] ss:$0 sm:$0xff]  ;;  %v2826_v29 = vld [vmem:[#allocation10 + $0x6] ss:$0 sm:$0xff] }
  0x8b   : > { %431 = vmatprep.subr.mxu0 %v394_v5  ;;  %v2840_v33 = vld [vmem:[#allocation10 + $0x5] ss:$0 sm:$0xff]  ;;  %v2853_v35 = vld [vmem:[#allocation10 + $0x7] ss:$0 sm:$0xff]  ;;  %s1876_s2 = scalar_lea.sflag [#allocation4], %s2768_s1  ;;  %s2474_s3 = scalar_lea.vmem %s1890_s24, 128 }
  0x8c   : > { %432 = vmatpush1.msra.mxu0 %v393_v6  ;;  %p2475_p5 = scmp.ne.s32.totalorder %s1890_s24, %s2474_s3  ;;  %p3007_p4 = scmp.ne.s32.totalorder %s2996_s17, 0 }
  0x8d   : > { %433 = vmatprep.subr.mxu0 %v392_v8 }
  0x8e   : > { %434 = vmatpush1.msra.mxu0 %v391_v9  ;;  %p2476_p8 = pnand %p2475_p5, %p3007_p4 }
  0x8f   : > { %2025 = vmatmul.mubr.msk.f32.vlgmr.msra.gmra.mxu0 %vm399_vm0, %v390_v10  ;;  %2106 = vmatprep.subr.mxu0 %v2563_v0 }
  0x90   : > { %2108 = vmatprep.mubr.msk.f32.mxu0 %vm2565_vm1, %v2563_v0  ;;  %p2477_p9 = pneg %p2476_p8 }
  0xfa   : > { %v479_v11 = vpop.permute.xlu0 %478 }
 0x14f   : > { %v469_v12 = vpop.f32.mrf.mxu0 }
 0x150   : > { %v481_v13 = vmul.f32 %v479_v11, %v469_v12  ;;  %v475_v15 = vmul.f32 %v474_v14, %v469_v12 }
 0x151   : > { %v2818_v27 = vpop.f32.mrf.mxu0 }
 0x152   : > { %483 = vrot.lane.b32.xlu0 %v481_v13, %s2564_s12  ;;  %v551_v32 = vmul.f32 %v2026_v19, %v2818_v27  ;;  %v552_v37 = vmul.f32 %v2027_v23, %v2818_v27  ;;  %s2567_s12 = smov [#allocation13]  }
 0x153   : > { %s2478_s11 = sshll.u32 %s2567_s12, 4  ;;  %s2479_s11 = int_to_ptr.vmem [resolvable:$false] %s2478_s11 }
 0x154   : > { %s2480_s25 = scalar_lea.vmem %s2479_s11, 256  ;;  %p2481_p7 = scmp.lt.s32.totalorder %s1890_s24, %s2479_s11 }
 0x155   : > { %p2482_p0 = scmp.lt.s32.totalorder %s2480_s25, %s2474_s3 }
 0x157   : > { %p2483_p2 = por %p2482_p0, %p2481_p7 }
 0x159   : > { %p2484_p1 = pnand %p2483_p2, %p2477_p9 }
 0x1c4   : > { %v484_v16 = vpop.permute.xlu0 %483 }
 0x1c5   : > { %v486_v17 = vadd.f32 %v484_v16, %v475_v15 }
 0x1c7   : > { %560 = vrot.lane.b32.xlu1 %v486_v17, %s2566_s20  ;;  %v543_v21 = vmul.f32 %v2026_v19, %v486_v17  ;;  %v545_v22 = vmul.f32 %v2800_v20, %v486_v17  ;;  %v544_v25 = vmul.f32 %v2027_v23, %v486_v17  ;;  %v547_v26 = vmul.f32 %v2809_v24, %v486_v17 }
 0x1c8   : > { %v546_v30 = vmul.f32 %v2824_v28, %v486_v17  ;;  %v549_v31 = vmul.f32 %v2826_v29, %v486_v17  ;;  %v548_v34 = vmul.f32 %v2840_v33, %v486_v17  ;;  %v550_v36 = vmul.f32 %v2853_v35, %v486_v17 }
 0x239   : > { %v561_v18 = vpop.permute.xlu1 %560 }
 0x23a   : > { %2097 = vmatpush3.xpose.msk.msra.mxu1 %vm399_vm0, %v561_v18  ;;  %2107 = vmatpush3.xpose.msk.msra.mxu0 %vm399_vm0, %v561_v18 }
 0x23b   : > { %2101 = vmatprep.subr.mxu1 %v2563_v0  ;;  %2116 = vmatprep.subr.mxu0 %v2563_v0 }
 0x23d   : > { %2099 = vmatmul.mubr.msk.f32.vlgmr.msra.gmra.mxu1 %vm399_vm0, %v543_v21  ;;  %2109 = vmatmul.mubr.msk.f32.vlgmr.msra.gmra.mxu0 %vm399_vm0, %v545_v22 }
 0x23e   : > { %2102 = vmatpush3.xpose.msk.msra.mxu1 %vm399_vm0, %v561_v18  ;;  %2117 = vmatpush3.xpose.msk.msra.mxu0 %vm399_vm0, %v561_v18 }
 0x23f   : > { %2103 = vmatprep.mubr.msk.f32.mxu1 %vm2565_vm1, %v2563_v0  ;;  %2118 = vmatprep.mubr.msk.f32.mxu0 %vm2565_vm1, %v2563_v0 }
 0x240   : > { %2111 = vmatprep.subr.mxu1 %v2563_v0  ;;  %2126 = vmatprep.subr.mxu0 %v2563_v0 }
 0x241   : > { %2104 = vmatmul.mubr.msk.f32.vlgmr.msra.gmra.mxu1 %vm399_vm0, %v544_v25  ;;  %2119 = vmatmul.mubr.msk.f32.vlgmr.msra.gmra.mxu0 %vm399_vm0, %v547_v26 }
 0x242   : > { %2112 = vmatpush3.xpose.msk.msra.mxu1 %vm399_vm0, %v561_v18  ;;  %2127 = vmatpush3.xpose.msk.msra.mxu0 %vm399_vm0, %v561_v18 }
 0x243   : > { %2113 = vmatprep.mubr.msk.f32.mxu1 %vm2565_vm1, %v2563_v0  ;;  %2128 = vmatprep.mubr.msk.f32.mxu0 %vm2565_vm1, %v2563_v0 }
 0x244   : > { %2121 = vmatprep.subr.mxu1 %v2563_v0  ;;  %2136 = vmatprep.subr.mxu0 %v2563_v0 }
 0x245   : > { %2114 = vmatmul.mubr.msk.f32.vlgmr.msra.gmra.mxu1 %vm399_vm0, %v546_v30  ;;  %2129 = vmatmul.mubr.msk.f32.vlgmr.msra.gmra.mxu0 %vm399_vm0, %v549_v31 }
 0x246   : > { %2122 = vmatpush3.xpose.msk.msra.mxu1 %vm399_vm0, %v561_v18  ;;  %2137 = vmatpush3.msra.mxu0 %v551_v32 }
 0x247   : > { %2123 = vmatprep.mubr.msk.f32.mxu1 %vm2565_vm1, %v2563_v0  ;;  %2131 = vmatprep.subr.mxu1 %v2563_v0 }
 0x248   : > { %2138 = vmatprep.mubr.msk.f32.mxu0 %vm2565_vm1, %v2563_v0  ;;  %2146 = vmatprep.subr.mxu0 %v2563_v0 }
 0x249   : > { %2124 = vmatmul.mubr.msk.f32.vlgmr.msra.gmra.mxu1 %vm399_vm0, %v548_v34 }
 0x24a   : > { %2132 = vmatpush3.xpose.msk.msra.mxu1 %vm399_vm0, %v561_v18  ;;  %2133 = vmatprep.mubr.msk.f32.mxu1 %vm2565_vm1, %v2563_v0 }
 0x24b   : > { %2141 = vmatprep.subr.mxu1 %v2563_v0 }
 0x24d   : > { %2134 = vmatmul.mubr.msk.f32.vlgmr.msra.gmra.mxu1 %vm399_vm0, %v550_v36 }
 0x24e   : > { %2142 = vmatpush3.msra.mxu1 %v552_v37  ;;  %2143 = vmatprep.mubr.msk.f32.mxu1 %vm2565_vm1, %v2563_v0 }
 0x24f   : > { %2151 = vmatprep.subr.mxu1 %v2563_v0 }
 0x2fd   : > { %v633_v38 = vpop.f32.mrf.mxu1  ;;  %v779_v39 = vpop.f32.mrf.mxu0 }
 0x2fe   : > { %v1149_v40 = vsel %vm1148_vm2, %v633_v38, -inf  ;;  %v1155_v51 = vsel %vm1148_vm2, %v779_v39, -inf }
 0x2ff   : > { %1150 = vmax.xlane.f32.xlu1 %v1149_v40  ;;  %v2100_v41 = vpop.f32.mrf.mxu1  ;;  %v2110_v42 = vpop.f32.mrf.mxu0 }
 0x301   : > { %v706_v43 = vpop.f32.mrf.mxu1  ;;  %v925_v44 = vpop.f32.mrf.mxu0 }
 0x302   : > { %v1152_v45 = vsel %vm1148_vm2, %v706_v43, -inf  ;;  %v1161_v56 = vsel %vm1148_vm2, %v925_v44, -inf }
 0x303   : > { %1153 = vmax.xlane.f32.xlu0 %v1152_v45  ;;  %v2105_v46 = vpop.f32.mrf.mxu1  ;;  %v2120_v47 = vpop.f32.mrf.mxu0 }
 0x305   : > { %v852_v48 = vpop.f32.mrf.mxu1  ;;  %v1071_v49 = vpop.f32.mrf.mxu0 }
 0x306   : > { %v1158_v50 = vsel %vm1148_vm2, %v852_v48, -inf  ;;  %v1167_v60 = vsel %vm1148_vm2, %v1071_v49, -inf }
 0x307   : > { %1159 = vmax.xlane.f32.xlu1 %v1158_v50  ;;  %v2115_v52 = vpop.f32.mrf.mxu1  ;;  %1156 = vmax.xlane.f32.xlu0 %v1155_v51  ;;  %v2130_v53 = vpop.f32.mrf.mxu0 }
 0x308   : > { %v1237_v53 = vld [vmem:[#allocation11] sm:$0xff] }
 0x309   : > { %v998_v54 = vpop.f32.mrf.mxu1 }
 0x30a   : > { %v1164_v55 = vsel %vm1148_vm2, %v998_v54, -inf }
 0x30b   : > { %1165 = vmax.xlane.f32.xlu1 %v1164_v55  ;;  %v2125_v57 = vpop.f32.mrf.mxu1  ;;  %1162 = vmax.xlane.f32.xlu0 %v1161_v56 }
 0x30d   : > { %v1144_v58 = vpop.f32.mrf.mxu1 }
 0x30e   : > { %v1170_v59 = vsel %vm1148_vm2, %v1144_v58, -inf }
 0x30f   : > { %1171 = vmax.xlane.f32.xlu1 %v1170_v59  ;;  %v2135_v61 = vpop.f32.mrf.mxu1  ;;  %1168 = vmax.xlane.f32.xlu0 %v1167_v60  ;;  %v553_v59 = vmul.f32 %v2800_v20, %v2818_v27  ;;  %v1238_v60 = vld [vmem:[#allocation11 + $0x8] sm:$0xff]  ;;  %v1239_v20 = vld [vmem:[#allocation11 + $0x10] sm:$0xff] }
 0x388   : > { %v1151_v62 = vpop.xlane.xlu1 %1150 }
 0x389   : > { %v1173_v63 = vsub.f32 %v633_v38, %v1151_v62 }
 0x38b   : > { %v1181_v1 = vmul.f32 1.442695, %v1173_v63 }
 0x38c   : > { %v1154_v2 = vpop.xlane.xlu0 %1153 }
 0x38d   : > { %2282 = vpow2.f32 %v1181_v1  ;;  %v1174_v3 = vsub.f32 %v706_v43, %v1154_v2  ;;  %v554_v1 = vmul.f32 %v2824_v28, %v2818_v27  ;;  %v1240_v2 = vld [vmem:[#allocation11 + $0x18] sm:$0xff]  ;;  %v1242_v28 = vld [vmem:[#allocation11 + $0x28] sm:$0xff] }
 0x38f   : > { %v1183_v4 = vmul.f32 1.442695, %v1174_v3 }
 0x390   : > { %v1160_v5 = vpop.xlane.xlu1 %1159  ;;  %v1157_v6 = vpop.xlane.xlu0 %1156 }
 0x391   : > { %2284 = vpow2.f32 %v1183_v4  ;;  %v1176_v7 = vsub.f32 %v852_v48, %v1160_v5  ;;  %v1175_v8 = vsub.f32 %v779_v39, %v1157_v6 }
 0x393   : > { %v1187_v9 = vmul.f32 1.442695, %v1176_v7  ;;  %v1185_v10 = vmul.f32 1.442695, %v1175_v8 }
 0x394   : > { %v1166_v11 = vpop.xlane.xlu1 %1165  ;;  %v1163_v12 = vpop.xlane.xlu0 %1162 }
 0x395   : > { %2286 = vpow2.f32 %v1187_v9  ;;  %v1178_v13 = vsub.f32 %v998_v54, %v1166_v11  ;;  %v1177_v14 = vsub.f32 %v925_v44, %v1163_v12  ;;  %v556_v9 = vmul.f32 %v2840_v33, %v2818_v27  ;;  %v1241_v12 = vld [vmem:[#allocation11 + $0x20] sm:$0xff] }
 0x396   : > { %2288 = vpow2.f32 %v1185_v10  ;;  %v555_v11 = vmul.f32 %v2809_v24, %v2818_v27  ;;  %v558_v24 = vmul.f32 %v2853_v35, %v2818_v27 }
 0x397   : > { %v1191_v15 = vmul.f32 1.442695, %v1178_v13  ;;  %v1189_v16 = vmul.f32 1.442695, %v1177_v14 }
 0x398   : > { %v1172_v17 = vpop.xlane.xlu1 %1171  ;;  %v1169_v18 = vpop.xlane.xlu0 %1168 }
 0x399   : > { %2290 = vpow2.f32 %v1191_v15  ;;  %v1180_v19 = vsub.f32 %v1144_v58, %v1172_v17  ;;  %v1179_v21 = vsub.f32 %v1071_v49, %v1169_v18  ;;  %v1244_v17 = vld [vmem:[#allocation11 + $0x38] sm:$0xff] }
 0x39a   : > { %v2283_v22 = vpop.eup %2282  ;;  %2292 = vpow2.f32 %v1189_v16 }
 0x39b   : > { %v1195_v23 = vmul.f32 1.442695, %v1180_v19  ;;  %v1193_v25 = vmul.f32 1.442695, %v1179_v21  ;;  %v1197_v26 = vsel %vm1148_vm2, %v2283_v22, 0.0  ;;  %v557_v19 = vmul.f32 %v2826_v29, %v2818_v27  ;;  %v1243_v21 = vld [vmem:[#allocation11 + $0x30] sm:$0xff] }
 0x39c   : > { %1198 = vadd.xlane.f32.xlu0 %v1197_v26 }
 0x39d   : > { %2294 = vpow2.f32 %v1195_v23 }
 0x39e   : > { %v2285_v30 = vpop.eup %2284  ;;  %2296 = vpow2.f32 %v1193_v25 }
 0x39f   : > { %v1200_v31 = vsel %vm1148_vm2, %v2285_v30, 0.0 }
 0x3a0   : > { %1201 = vadd.xlane.f32.xlu1 %v1200_v31 }
 0x3a2   : > { %v2287_v32 = vpop.eup %2286 }
 0x3a3   : > { %v2289_v34 = vpop.eup %2288  ;;  %v1206_v36 = vsel %vm1148_vm2, %v2287_v32, 0.0 }
 0x3a4   : > { %1207 = vadd.xlane.f32.xlu1 %v1206_v36  ;;  %v1203_v37 = vsel %vm1148_vm2, %v2289_v34, 0.0 }
 0x3a5   : > { %1204 = vadd.xlane.f32.xlu0 %v1203_v37 }
 0x3a6   : > { %v2291_v38 = vpop.eup %2290 }
 0x3a7   : > { %v2874_v39 = vpop.eup %2292  ;;  %v1212_v40 = vsel %vm1148_vm2, %v2291_v38, 0.0 }
 0x3a8   : > { %1213 = vadd.xlane.f32.xlu1 %v1212_v40  ;;  %v1209_v41 = vsel %vm1148_vm2, %v2874_v39, 0.0 }
 0x3a9   : > { %1210 = vadd.xlane.f32.xlu0 %v1209_v41 }
 0x3aa   : > { %v2879_v42 = vpop.eup %2294 }
 0x3ab   : > { %v2881_v43 = vpop.eup %2296  ;;  %v1218_v44 = vsel %vm1148_vm2, %v2879_v42, 0.0 }
 0x3ac   : > { %1219 = vadd.xlane.f32.xlu1 %v1218_v44  ;;  %v1215_v45 = vsel %vm1148_vm2, %v2881_v43, 0.0 }
 0x3ad   : > { %1216 = vadd.xlane.f32.xlu0 %v1215_v45 }
 0x425   : > { %v1199_v46 = vpop.xlane.xlu0 %1198 }
 0x426   : > { %2298 = vrcp.f32 %v1199_v46 }
 0x429   : > { %v1202_v47 = vpop.xlane.xlu1 %1201 }
 0x42a   : > { %2300 = vrcp.f32 %v1202_v47 }
 0x42d   : > { %v1208_v48 = vpop.xlane.xlu1 %1207 }
 0x42e   : > { %2302 = vrcp.f32 %v1208_v48  ;;  %v1205_v49 = vpop.xlane.xlu0 %1204 }
 0x42f   : > { %2304 = vrcp.f32 %v1205_v49 }
 0x431   : > { %v1214_v50 = vpop.xlane.xlu1 %1213 }
 0x432   : > { %2306 = vrcp.f32 %v1214_v50  ;;  %v1211_v51 = vpop.xlane.xlu0 %1210 }
 0x433   : > { %v2299_v52 = vpop.eup %2298  ;;  %2308 = vrcp.f32 %v1211_v51 }
 0x434   : > { %v1229_v54 = vmul.f32 %v2299_v52, %v2283_v22 }
 0x435   : > { %v1220_v55 = vpop.xlane.xlu1 %1219 }
 0x436   : > { %2310 = vrcp.f32 %v1220_v55  ;;  %v1217_v56 = vpop.xlane.xlu0 %1216  ;;  %v1245_v57 = vadd.f32 %v1237_v53, %v1229_v54 }
 0x437   : > { %v2301_v58 = vpop.eup %2300  ;;  %2312 = vrcp.f32 %v1217_v56 }
 0x438   : > { %2139 = vmatmul.mubr.msk.f32.vlgmr.msra.gmra.mxu0 %vm1148_vm2, %v1245_v57  ;;  %v1230_v61 = vmul.f32 %v2301_v58, %v2285_v30 }
 0x439   : > { %2147 = vmatpush3.msra.mxu0 %v553_v59  ;;  %2148 = vmatprep.mubr.msk.f32.mxu0 %vm2565_vm1, %v2563_v0 }
 0x43a   : > { %v1246_v62 = vadd.f32 %v1238_v60, %v1230_v61  ;;  %2156 = vmatprep.subr.mxu0 %v2563_v0  ;;  %v2058_v61 = vld [vmem:[%s2978_s6] ss:$0 sm:$0xff] }
 0x43b   : > { %v2303_v63 = vpop.eup %2302 }
 0x43c   : > { %v2305_v3 = vpop.eup %2304  ;;  %2144 = vmatmul.mubr.msk.f32.vlgmr.msra.gmra.mxu1 %vm1148_vm2, %v1246_v62  ;;  %v1232_v4 = vmul.f32 %v2303_v63, %v2287_v32  ;;  %v2059_v63 = vld [vmem:[%s2979_s7] ss:$0 sm:$0xff] }
 0x43d   : > { %2152 = vmatpush3.msra.mxu1 %v554_v1  ;;  %2153 = vmatprep.mubr.msk.f32.mxu1 %vm2565_vm1, %v2563_v0  ;;  %v1231_v5 = vmul.f32 %v2305_v3, %v2289_v34 }
 0x43e   : > { %2161 = vmatprep.subr.mxu1 %v2563_v0  ;;  %v1248_v6 = vadd.f32 %v1240_v2, %v1232_v4 }
 0x43f   : > { %v2307_v7 = vpop.eup %2306  ;;  %v1247_v8 = vadd.f32 %v1239_v20, %v1231_v5 }
 0x440   : > { %v2309_v10 = vpop.eup %2308  ;;  %2154 = vmatmul.mubr.msk.f32.vlgmr.msra.gmra.mxu1 %vm1148_vm2, %v1248_v6  ;;  %v1234_v13 = vmul.f32 %v2307_v7, %v2291_v38 }
 0x441   : > { %2149 = vmatmul.mubr.msk.f32.vlgmr.msra.gmra.mxu0 %vm1148_vm2, %v1247_v8  ;;  %2162 = vmatpush3.msra.mxu1 %v556_v9  ;;  %v1233_v14 = vmul.f32 %v2309_v10, %v2874_v39 }
 0x442   : > { %2157 = vmatpush3.msra.mxu0 %v555_v11  ;;  %2158 = vmatprep.mubr.msk.f32.mxu0 %vm2565_vm1, %v2563_v0  ;;  %v1250_v15 = vadd.f32 %v1242_v28, %v1234_v13 }
 0x443   : > { %v2311_v33 = vpop.eup %2310  ;;  %2163 = vmatprep.mubr.msk.f32.mxu1 %vm2565_vm1, %v2563_v0  ;;  %2166 = vmatprep.subr.mxu0 %v2563_v0  ;;  %v1249_v16 = vadd.f32 %v1241_v12, %v1233_v14 }
 0x444   : > { %v2313_v18 = vpop.eup %2312  ;;  %2171 = vmatprep.subr.mxu1 %v2563_v0  ;;  %2164 = vmatmul.mubr.msk.f32.vlgmr.msra.gmra.mxu1 %vm1148_vm2, %v1250_v15  ;;  %v1236_v22 = vmul.f32 %v2311_v33, %v2879_v42 }
 0x445   : > { %2159 = vmatmul.mubr.msk.f32.vlgmr.msra.gmra.mxu0 %vm1148_vm2, %v1249_v16  ;;  %2172 = vmatpush3.msra.mxu1 %v558_v24  ;;  %v1235_v23 = vmul.f32 %v2313_v18, %v2881_v43 }
 0x446   : > { %2167 = vmatpush3.msra.mxu0 %v557_v19  ;;  %2168 = vmatprep.mubr.msk.f32.mxu0 %vm2565_vm1, %v2563_v0  ;;  %v1252_v35 = vadd.f32 %v1244_v17, %v1236_v22 }
 0x447   : > { %2173 = vmatprep.mubr.msk.f32.mxu1 %vm2565_vm1, %v2563_v0  ;;  %v1251_v25 = vadd.f32 %v1243_v21, %v1235_v23 }
 0x448   : > { %2174 = vmatmul.mubr.msk.f32.vlgmr.msra.gmra.mxu1 %vm1148_vm2, %v1252_v35 }
 0x449   : > { %2169 = vmatmul.mubr.msk.f32.vlgmr.msra.gmra.mxu0 %vm1148_vm2, %v1251_v25 }
 0x4f8   : > { %v1322_v27 = vpop.f32.mrf.mxu0 }
 0x4fa   : > { %v2140_v29 = vpop.f32.mrf.mxu0 }
 0x4fc   : > { %v1395_v26 = vpop.f32.mrf.mxu1 }
 0x4fd   : > { %v1837_v31 = vadd.f32 %v1395_v26, %v1322_v27 }
 0x4fe   : > { %v2145_v30 = vpop.f32.mrf.mxu1 }
 0x500   : > { %v1541_v32 = vpop.f32.mrf.mxu1 }
 0x501   : > { %v1468_v34 = vpop.f32.mrf.mxu0 }
 0x502   : > { %v1838_v36 = vadd.f32 %v1837_v31, %v1468_v34  ;;  %v2155_v37 = vpop.f32.mrf.mxu1 }
 0x503   : > { %v2150_v38 = vpop.f32.mrf.mxu0 }
 0x504   : > { %v1839_v39 = vadd.f32 %v1838_v36, %v1541_v32  ;;  %v1687_v40 = vpop.f32.mrf.mxu1 }
 0x505   : > { %v1614_v41 = vpop.f32.mrf.mxu0 }
 0x506   : > { %v1840_v42 = vadd.f32 %v1839_v39, %v1614_v41  ;;  %v2165_v0 = vpop.f32.mrf.mxu1 }
 0x507   : > { %v2160_v43 = vpop.f32.mrf.mxu0 }
 0x508   : > { %v1841_v44 = vadd.f32 %v1840_v42, %v1687_v40  ;;  %v1833_v45 = vpop.f32.mrf.mxu1 }
 0x509   : > { %v1760_v46 = vpop.f32.mrf.mxu0 }
 0x50a   : > { %v1842_v47 = vadd.f32 %v1841_v44, %v1760_v46  ;;  %v2175_v48 = vpop.f32.mrf.mxu1 }
 0x50b   : > { %v2170_v49 = vpop.f32.mrf.mxu0 }
 0x50c   : > { %v1843_v50 = vadd.f32 %v1842_v47, %v1833_v45 }
 0x50e   : > { %v1844_v51 = vsel %vm399_vm0, %v1843_v50, 0.0 }
 0x50f   : > { %1845 = vadd.xlane.f32.xlu0 %v1844_v51 }
 0x598   : > { %v1846_v52 = vpop.xlane.xlu0 %1845 }
 0x599   : > { %v1848_v53 = vmul.f32 0.03125, %v1846_v52 }
 0x59b   : > { %v1849_v54 = vsub.f32 %v1843_v50, %v1848_v53 }
 0x59d   : > { %v1850_v55 = vmul.f32 %v1849_v54, %v1849_v54 }
 0x59f   : > { %v1851_v56 = vsel %vm399_vm0, %v1850_v55, 0.0 }
 0x5a0   : > { %1852 = vadd.xlane.f32.xlu1 %v1851_v56 }
 0x629   : > { %v1853_v57 = vpop.xlane.xlu1 %1852 }
 0x62a   : > { %v1854_v58 = vmul.f32 0.03125, %v1853_v57 }
 0x62c   : > { %v1855_v59 = vadd.f32 1e-05, %v1854_v58 }
 0x62e   : > { %2314 = vrsqrt.f32 %v1855_v59 }
 0x63b   : > { %v2315_v60 = vpop.eup %2314 }
 0x63c   : > { %v1857_v62 = vmul.f32 %v2315_v60, %v1849_v54 }
 0x63e   : > { %v1865_v1 = vmul.f32 %v2058_v61, %v1857_v62 }
 0x640   : > { %v1873_v2 = vadd.f32 %v2059_v63, %v1865_v1 }
 0x642   : > { %1874 = vst.msk [vmem:[%s389_s18] sm:$0xff] %vm399_vm0, %v1873_v2 }
 0x643   : > { %2487 = shalt.err (!%p2484_p1)
}
 0x644   : > { %s2488_s20 = scalar_lea.hbm %s1887_s22, 128  ;;  %s2492_s10 = scalar_lea.hbm %s2980_s8, 256 }
 0x645   : > { %p2489_p3 = scmp.ne.s32.totalorder %s1887_s22, %s2488_s20  ;;  %p2493_p10 = scmp.lt.s32.totalorder %s1887_s22, %s2980_s8 }
 0x646   : > { %p2494_p12 = scmp.lt.s32.totalorder %s2492_s10, %s2488_s20 }
 0x647   : > { %p2490_p6 = pnand %p2489_p3, %p3007_p4 }
 0x648   : > { %p2495_p13 = por %p2494_p12, %p2493_p10 }
 0x649   : > { %p2491_p11 = pneg %p2490_p6 }
 0x64b   : > { %p2496_p5 = pnand %p2495_p13, %p2491_p11 }
 0x64d   : > { %2499 = shalt.err (!%p2496_p5)
}
 0x64e   : > { %2198 = dma.vmem_to_hbm [thread:$0]  (%p3007_p4), %s1890_s24, 128, %s1887_s22, %s1876_s2  }
 0x64f PF: > { %s1901_s26 = sand.u32 1, %s2538_s27   ;;  %p3008_p8 = scmp.ne.s32.totalorder %s2997_s23, 0 }
 0x650   : > { %p3009_p9 = scmp.ge.s32.totalorder %s2550_s30, 2  ;;  %s1902_s18 = scalar_lea.sflag [#allocation4], %s1901_s26 }
 0x652   : > { %p2221_p7 = pnand %p3009_p9, %p3008_p8 }
 0x654   : > { %p2222_p0 = pneg %p2221_p7 }
 0x656   : > { %2533 = dma.done.wait (%p2222_p0), %s1902_s18, 128  }
 0x657   : > { %2535 = vsyncadd (%p2222_p0), %s1902_s18, 4294967168  ;;  %p24_p2 = scmp.ge.s32.totalorder %s2705_s13, 4   ;;  %s3010_s27 = smov %s2542_s28 }
 0x658   : > { %s3011_s28 = smov %s2546_s29  ;;  %s3012_s29 = smov %s2716_s19 }
 0x659   : > { %s3013_s30 = smov %s2705_s13  ;;  %26 = sbr.rel (!%p24_p2) target bundleno = 12 (0xc), region = 117 }
 0x65e   :  { %1907 = vsyncpa [#allocation3], 1 }
 0x65f   :  { %1909 = vsyncpa [#allocation3 + $0x1], 1 }
 0x660   :  { %1910 = vsyncpa [#allocation6], 1 }
 0x661   :  { %1911 = vsyncpa [#allocation9], 1 }
 0x662   :  { %1912 = vsyncpa [#allocation12], 1 }
 0x663   :  { %1913 = vsyncpa [#allocation4], 1 }
 0x664   :  { %1915 = vsyncpa [#allocation4 + $0x1], 1 }

</bundles_post_ra>
